<compile_context>
chip_gen: v7x
topology: tpu7x:2x2x1
jax: 0.10.0
libtpu: 0.0.40
codegen_flags: <defaults>
</compile_context>

<pallas_src>
import functools

import jax
import jax.numpy as jnp
from jax.experimental import pallas as pl
from jax.experimental.pallas import tpu as pltpu

NETWORK_DIM = 32          # stand-in for bittensor.__network_dim__ (small synthetic)
RETURN_CODE_SUCCESS = 1   # bittensor.proto.ReturnCode.Success

_LANE = 128               # TPU lane width
_SUBLANE = 8              # TPU sublane width
_MAX_TM = 1024            # max rows (batch*seq) per grid step
_GROUP = 8                # max endpoints per grid step


def _round_up(x, m):
    return ((x + m - 1) // m) * m


def _cdiv(a, b):
    return (a + b - 1) // b


def _choose_endpoint_tiling(E):
    """(g, e_pad): group up to _GROUP endpoints per step, but keep the
    endpoint grid axis at >=2 steps so both v7x TensorCores get work."""
    if E <= 1:
        return 1, 1
    e_steps = max(2, _cdiv(E, _GROUP))
    g = _cdiv(E, e_steps)
    return g, g * e_steps


def _choose_m_tiling(M):
    """(tm, m_pad) with minimal padding.  M sits on sublanes now, so tm only
    needs 8-alignment; derive tm from an even split of M instead of rounding
    M up to a multiple of a fixed tm (avoids up to tm-8 wasted rows)."""
    m_pad = _round_up(max(M, _SUBLANE), _SUBLANE)
    m_steps = _cdiv(m_pad, _MAX_TM)
    tm = _round_up(_cdiv(m_pad, m_steps), _SUBLANE)
    return tm, tm * m_steps


def _receptor_group_kernel(x_ref, w_ref, o_ref, *, g):
    # x_ref: (g, tm, D)    f32  -- natural (endpoint, rows, features) layout;
    #                              cast to bf16 on the VPU (hidden under DMA).
    # w_ref: (e_pad, D, N) bf16 -- ALL endpoint weights, resident in VMEM,
    #                              sliced per group (no per-step weight DMA).
    # o_ref: (g, tm, N)    f32  -- stored directly in final layout.
    e = pl.program_id(0)
    x = x_ref[...].astype(jnp.bfloat16)
    w = w_ref[pl.ds(e * g, g), :, :]
    o_ref[...] = jax.lax.dot_general(
        x, w,
        dimension_numbers=(((2,), (1,)), ((0,), (0,))),   # contract D, batch g
        preferred_element_type=jnp.float32,
    )


@jax.jit
def _receptor_pool_forward_impl(inputs_stacked, weights):
    E, B, S, D = inputs_stacked.shape
    N = weights.shape[-1]
    M = B * S

    g, e_pad = _choose_endpoint_tiling(E)
    tm, m_pad = _choose_m_tiling(M)

    # Natural layout (E, M, D): reshape is free; no transpose / cast pass.
    x = inputs_stacked.reshape(E, M, D)
    if e_pad != E or m_pad != M:
        x = jnp.pad(x, ((0, e_pad - E), (0, m_pad - M), (0, 0)))

    # Weights are tiny (E*D*N); bf16 cast + pad here is negligible.
    w = weights.astype(jnp.bfloat16)
    if e_pad != E:
        w = jnp.pad(w, ((0, e_pad - E), (0, 0), (0, 0)))

    grid = (e_pad // g, m_pad // tm)

    # VMEM budget sized for v7x (64 MiB physical, 32 MiB scoped default):
    # assume the <128-wide minor dims (D, N) are lane-padded to 128 in VMEM,
    # double-buffered x/out blocks plus the resident full weight array.
    d_vmem = _round_up(D, _LANE)
    n_vmem = _round_up(N, _LANE)
    buf_bytes = (2 * g * tm * (d_vmem * 4 + n_vmem * 4)
                 + 2 * e_pad * _round_up(D, _SUBLANE) * n_vmem * 2)
    vmem_limit = int(min(max(buf_bytes + (8 << 20), 16 << 20), 48 << 20))

    out = pl.pallas_call(
        functools.partial(_receptor_group_kernel, g=g),
        out_shape=jax.ShapeDtypeStruct((e_pad, m_pad, N), jnp.float32),
        grid=grid,
        in_specs=[
            pl.BlockSpec((g, tm, D), lambda e, m: (e, m, 0)),
            pl.BlockSpec((e_pad, D, N), lambda e, m: (0, 0, 0)),  # loaded once
        ],
        out_specs=pl.BlockSpec((g, tm, N), lambda e, m: (e, m, 0)),
        compiler_params=pltpu.CompilerParams(
            dimension_semantics=("parallel", "parallel"),
            vmem_limit_bytes=vmem_limit,
        ),
    )(x, w)

    # Output already in (E, M, N) layout; only strip padding and reshape.
    out = out[:E, :M, :].reshape(E, B, S, N)
    return out


def receptor_pool_forward(inputs_stacked, weights, timeout=12):
    """Synthetic ReceptorPool.forward.

    Args:
      inputs_stacked: (E, B, S, D) float32 -- one input tensor per endpoint.
      weights:        (E, D, N)    float32 -- per-endpoint synthetic receptor params.
      timeout:        unused (no RPC here); kept for signature parity.

    Returns:
      forward_outputs: (E, B, S, N) float32 stacked array; index [e] for the
                       per-endpoint tensor (stacked to avoid E host-side slices).
      forward_codes:   list of E ints (Success).
      forward_times:   list of E floats.
    """
    del timeout
    E = inputs_stacked.shape[0]
    out = _receptor_pool_forward_impl(inputs_stacked, weights)
    # TODO(synk): gRPC receptor creation, thread-pool dispatch, QPS-based
    # receptor eviction and Timeout/UnknownException return paths have no
    # Pallas equivalent; only the per-endpoint tensor path is modelled.
    forward_codes = [RETURN_CODE_SUCCESS] * E
    forward_times = [0.0] * E
    return out, forward_codes, forward_times


if __name__ == "__main__":
    E, B, S, D, N = 6, 2, 24, 32, NETWORK_DIM   # M = 48

    key = jax.random.PRNGKey(0)
    k_in, k_w = jax.random.split(key)

    inputs_stacked = jax.random.normal(k_in, (E, B, S, D), dtype=jnp.float32)
    weights = jax.random.normal(k_w, (E, D, N), dtype=jnp.float32) / jnp.sqrt(D)

    outs, codes, times = receptor_pool_forward(inputs_stacked, weights, timeout=12)
    outs = jax.block_until_ready(outs)

    # Reference with the same bf16 operands / f32 accumulation as the kernel.
    ref = jnp.einsum(
        "ebsd,edn->ebsn",
        inputs_stacked.astype(jnp.bfloat16),
        weights.astype(jnp.bfloat16),
        preferred_element_type=jnp.float32,
    )
    ref = jax.block_until_ready(ref)

    assert outs.shape == (E, B, S, N)
    assert outs.dtype == jnp.float32
    err = float(jnp.max(jnp.abs(outs - ref)))
    assert err < 2e-3, f"mismatch: {err}"
    assert codes == [RETURN_CODE_SUCCESS] * E
    assert len(times) == E

    print("KERNEL_OK")
</pallas_src>

<mosaic_0001>
module attributes {stable_mosaic.version = 11 : i64} {
  func.func @_receptor_group_kernel(%arg0: i32, %arg1: i32, %arg2: memref<3x48x32xf32, #tpu.memory_space<vmem>>, %arg3: memref<6x32x32xbf16, #tpu.memory_space<vmem>>, %arg4: memref<3x48x32xf32, #tpu.memory_space<vmem>>) attributes {dimension_semantics = [#tpu.dimension_semantics<parallel>, #tpu.dimension_semantics<parallel>], iteration_bounds = array<i64: 2, 1>, scalar_prefetch = 0 : i64, scratch_operands = 0 : i64, tpu.core_type = #tpu.core_type<tc>, window_params = [{transform_indices = @transform_0, window_bounds = array<i64: 3, 48, 32>}, {pipeline_mode = #tpu.pipeline_mode<synchronous>, transform_indices = @transform_1, window_bounds = array<i64: 6, 32, 32>}, {transform_indices = @transform_2, window_bounds = array<i64: 3, 48, 32>}]} {
    %c0 = arith.constant 0 : index
    %c0_0 = arith.constant 0 : index
    %c0_1 = arith.constant 0 : index
    %0 = vector.load %arg2[%c0, %c0_0, %c0_1] : memref<3x48x32xf32, #tpu.memory_space<vmem>>, vector<3x48x32xf32>
    %1 = arith.truncf %0 : vector<3x48x32xf32> to vector<3x48x32xbf16>
    %c3_i32 = arith.constant 3 : i32
    %2 = arith.muli %arg0, %c3_i32 : i32
    %3 = arith.index_cast %2 : i32 to index
    %c0_2 = arith.constant 0 : index
    %c0_3 = arith.constant 0 : index
    %4 = vector.load %arg3[%3, %c0_2, %c0_3] : memref<6x32x32xbf16, #tpu.memory_space<vmem>>, vector<3x32x32xbf16>
    %cst = arith.constant dense<0.000000e+00> : vector<3x48x32xf32>
    %5 = tpu.matmul %1, %4, %cst {dimension_numbers = #tpu.dot_dimension_numbers<[2], [1], [1], [2], [0, 0, 0, 1, 1, 2], [0], [0]>} : vector<3x48x32xbf16>, vector<3x32x32xbf16>, vector<3x48x32xf32> -> vector<3x48x32xf32>
    %c0_4 = arith.constant 0 : index
    %c0_5 = arith.constant 0 : index
    %c0_6 = arith.constant 0 : index
    %6 = vector.load %arg4[%c0_4, %c0_5, %c0_6] : memref<3x48x32xf32, #tpu.memory_space<vmem>>, vector<3x48x32xf32>
    tpu.vector_store %arg4[%c0_4, %c0_5, %c0_6], %5 {strides = array<i32>} : memref<3x48x32xf32, #tpu.memory_space<vmem>>, vector<3x48x32xf32>,
    return
  }
  func.func @transform_0(%arg0: i32, %arg1: i32) -> (i32, i32, i32) {
    %c0_i32 = arith.constant 0 : i32
    %c0_i32_0 = arith.constant 0 : i32
    return %arg0, %arg1, %c0_i32 : i32, i32, i32
  }
  func.func @transform_1(%arg0: i32, %arg1: i32) -> (i32, i32, i32) {
    %c0_i32 = arith.constant 0 : i32
    %c0_i32_0 = arith.constant 0 : i32
    %c0_i32_1 = arith.constant 0 : i32
    %c0_i32_2 = arith.constant 0 : i32
    return %c0_i32, %c0_i32_0, %c0_i32_1 : i32, i32, i32
  }
  func.func @transform_2(%arg0: i32, %arg1: i32) -> (i32, i32, i32) {
    %c0_i32 = arith.constant 0 : i32
    %c0_i32_0 = arith.constant 0 : i32
    return %arg0, %arg1, %c0_i32 : i32, i32, i32
  }
}

</mosaic_0001>

<bundles_post_ra>
// kernel: _receptor_pool_forward_impl.1
= control target key start
LH: loop header
LB: loop body
LE: loop exit
PB: predicated region body
PF: predicated region fallthrough
CT: control target
= control target key end

     0   :  { %7 = vsyncpa [#allocation3], 0  ;;  %s1061_s0 = inlined_call_operand.vmem [shape: f32[6,48,32], index: 0, kind: input, shape index: {}]   ;;  %s1062_s1 = inlined_call_operand.vmem [shape: bf16[6,32,32], index: 1, kind: input, shape index: {}]   ;;  %s1063_s2 = inlined_call_operand.hbm [shape: f32[6,48,32], index: 2, kind: output, shape index: {}]  }
   0x1   :  { %9 = vsyncpa [#allocation3 + $0x1], 0  ;;  %s837_s9 = smov 0   ;;  %s839_s10 = smov 0  }
   0x2   :  { %s841_s11 = smov 0   ;;  %s843_s12 = smov 0  }
   0x3   :  { %s845_s13 = smov 0   ;;  %s847_s14 = smov 0  }
   0x4 LB: > { %s574_s15 = sadd.s32 4294967295, %s815_s14   ;;  %s575_s16 = sadd.s32 4294967294, %s815_s14   ;;  %s815_s14 = sphi %s847_s14, %s15_s14   ;;  %s811_s13 = sphi %s845_s13, %s1070_s13   ;;  %s807_s12 = sphi %s843_s12, %s1069_s12   ;;  %s803_s11 = sphi %s841_s11, %s1068_s11   ;;  %s799_s10 = sphi %s839_s10, %s1067_s10   ;;  %s795_s9 = sphi %s837_s9, %s1066_s9  }
   0x5   : > { %s27_s17 = sadd.s32 1, %s811_s13  ;;  %s85_s18 = sadd.s32 1, %s803_s11 }
   0x6   : > { %p29_p0 = scmp.ge.s32.totalorder %s27_s17, 2  ;;  %p95_p1 = scmp.ne.s32.totalorder %s803_s11, %s799_s10 }
   0x7   : > { %p96_p2 = scmp.eq.s32.totalorder %s574_s15, 1  ;;  %p101_p3 = scmp.ne.s32.totalorder %s799_s10, %s795_s9 }
   0x8   : > { %s1072_s17 = smov (%p29_p0, %s27_s17), 0  ;;  %p102_p5 = scmp.eq.s32.totalorder %s575_s16, 1 }
   0x9   : > { %p877_p4 = por %p96_p2, %p95_p1  ;;  %s80_s20 = ssub.s32 %s811_s13, %s1072_s17 }
   0xa   : > { %p578_p6 = scmp.ge.s32.totalorder %s815_s14, 1  ;;  %p83_p7 = scmp.eq.s32.totalorder %s80_s20, 0 }
   0xb   : > { %p884_p8 = por %p102_p5, %p101_p3  ;;  %p138_p9 = scmp.lt.s32.totalorder %s815_s14, 3 }
   0xc   : > { %s890_s22 = scalar_select %p83_p7, %s803_s11, %s85_s18  }
   0xd   : > { %p139_p10 = pnand %p578_p6, %p138_p9 }
   0xe   : > { %s600_s23 = smul.u32 (!%p139_p10), 48, %s807_s12  ;;  %v817_v0 = vmov (!%p139_p10), 0.0   ;;  %vm818_vm0 = vmmov (!%p139_p10), 0   ;;  %vm235_vm1 = vcmask (!%p139_p10), 261120   ;;  %s162_s4 = sand.u32 (!%p139_p10), 1, %s799_s10  }
   0xf   : > { %142 = sbr.rel (%p139_p10) target bundleno = 290 (0x122), region = 28  ;;  %664 = vmatprep.subr.bf16.mxu1 (!%p139_p10), %v817_v0  ;;  %616 = vmatprep.subr.bf16.mxu0 (!%p139_p10), %v817_v0 }
  0x10   : > { %s165_s24 = smul.u32 (!%p139_p10), 3, %s807_s12  ;;  %s899_s27 = scalar_lea.vmem (!%p139_p10), %s1062_s1, %s600_s23  ;;  %624 = vmatprep.mubr.msk.bf16.mxu1 (!%p139_p10), %vm818_vm0, %v817_v0  ;;  %620 = vmatprep.mubr.msk.bf16.mxu0 (!%p139_p10), %vm818_vm0, %v817_v0 }
  0x11   : > { %v731_v1 = vld [vmem:[%s899_s27] sm:$0xff] (!%p139_p10)   ;;  %v732_v2 = vld [vmem:[%s899_s27 + $0x8] sm:$0xff] (!%p139_p10)   ;;  %v733_v3 = vld [vmem:[%s899_s27 + $0x10] sm:$0xff] (!%p139_p10)   ;;  %s668_s5 = smul.u32 (!%p139_p10), 144, %s162_s4  ;;  %s819_s23 = smov (!%p139_p10), [#allocation2]  }
  0x12   : > { %p167_p11 = scmp.lt.s32.totalorder (!%p139_p10), %s165_s24, 5  ;;  %666 = vmatpush3.bf16.msra.mxu1 (!%p139_p10), %v731_v1  ;;  %617 = vmatpush3.bf16.msra.mxu0 (!%p139_p10), %v731_v1  ;;  %v734_v9 = vld [vmem:[%s899_s27 + $0x20] sm:$0xff] (!%p139_p10)   ;;  %v735_v13 = vld [vmem:[%s899_s27 + $0x18] sm:$0xff] (!%p139_p10)   ;;  %v736_v14 = vld [vmem:[%s899_s27 + $0x28] sm:$0xff] (!%p139_p10)   ;;  %s677_s7 = smul.u32 (!%p139_p10), 2304, %s807_s12 }
  0x13   : > { %665 = vmatprep.subr.bf16.mxu1 (!%p139_p10), %v817_v0  ;;  %618 = vmatprep.subr.bf16.mxu0 (!%p139_p10), %v817_v0  ;;  %s966_s6 = scalar_lea.vmem (!%p139_p10), [#allocation2], %s668_s5  ;;  %s1015_s12 = scalar_lea.sflag (!%p139_p10), [#allocation3], %s162_s4 }
  0x14   : > { %s493_s8 = sshll.u32 (!%p139_p10), %s966_s6, 4  ;;  %s1005_s18 = scalar_lea.hbm (!%p139_p10), %s1063_s2, %s677_s7  ;;  %s1007_s8 = int_to_ptr.vmem [resolvable:$true] %s493_s8 }
  0x15   : > { %s737_s20 = scalar_lea.vmem (!%p139_p10), %s1007_s8, 2304 }
  0x16   : > { %s1074_s24 = smov (!%p167_p11, %s165_s24), 5  ;;  %667 = vmatpush3.bf16.msra.mxu1 %v732_v2  ;;  %619 = vmatpush3.bf16.msra.mxu0 %v732_v2  ;;  %p738_p12 = scmp.ne.s32.totalorder %s1007_s8, %s737_s20 }
  0x17   : > { %s669_s28 = smul.u32 48, %s1074_s24  ;;  %632 = vmatprep.subr.bf16.mxu1 %v817_v0  ;;  %648 = vmatprep.subr.bf16.mxu0 %v817_v0  ;;  %s741_s24 = sshll.u32 %s819_s23, 4  ;;  %s742_s24 = int_to_ptr.vmem [resolvable:$false] %s741_s24 }
  0x18   : > { %p739_p13 = pnand %p738_p12, %p877_p4  ;;  %s743_s25 = scalar_lea.vmem %s742_s24, 4608 }
  0x19   : > { %s912_s3 = scalar_lea.vmem %s1061_s0, %s669_s28  ;;  %p744_p1 = scmp.lt.s32.totalorder %s1007_s8, %s742_s24 }
  0x1a   : > { %v182_v4 = vld [vmem:[%s912_s3 + $0x10] sm:$0xff]  ;;  %v183_v5 = vld [vmem:[%s912_s3 + $0x18] sm:$0xff]  ;;  %v180_v6 = vld [vmem:[%s912_s3] sm:$0xff]  ;;  %p740_p0 = pneg %p739_p13  ;;  %p745_p2 = scmp.lt.s32.totalorder %s743_s25, %s737_s20 }
  0x1b   : > { %v199_v7 = vpack.c.bf16 %v183_v5, %v182_v4  ;;  %v181_v8 = vld [vmem:[%s912_s3 + $0x8] sm:$0xff]  ;;  %v184_v11 = vld [vmem:[%s912_s3 + $0x20] sm:$0xff]  ;;  %v186_v19 = vld [vmem:[%s912_s3 + $0x30] sm:$0xff] }
  0x1c   : > { %v198_v10 = vpack.c.bf16 %v181_v8, %v180_v6  ;;  %v185_v12 = vld [vmem:[%s912_s3 + $0x28] sm:$0xff]  ;;  %v192_v15 = vld [vmem:[%s912_s3 + $0x60] sm:$0xff]  ;;  %v187_v20 = vld [vmem:[%s912_s3 + $0x38] sm:$0xff]  ;;  %p746_p3 = por %p745_p2, %p744_p1 }
  0x1d   : > { %625 = vmatmul.mubr.msk.bf16.vlgmr.msra.gmra.mrb[0].mxu1 %vm235_vm1, %v199_v7  ;;  %v193_v16 = vld [vmem:[%s912_s3 + $0x68] sm:$0xff]  ;;  %v200_v17 = vpack.c.bf16 %v185_v12, %v184_v11  ;;  %v194_v21 = vld [vmem:[%s912_s3 + $0x70] sm:$0xff]  ;;  %v195_v22 = vld [vmem:[%s912_s3 + $0x78] sm:$0xff]  ;;  %v201_v23 = vpack.c.bf16 %v187_v20, %v186_v19 }
  0x1e   : > { %633 = vmatpush3.bf16.msra.mxu1 %v733_v3  ;;  %621 = vmatmul.mubr.msk.bf16.vlgmr.msra.gmra.mrb[0].mxu0 %vm235_vm1, %v198_v10  ;;  %v204_v18 = vpack.c.bf16 %v193_v16, %v192_v15  ;;  %v205_v24 = vpack.c.bf16 %v195_v22, %v194_v21  ;;  %v188_v25 = vld [vmem:[%s912_s3 + $0x40] sm:$0xff]  ;;  %v189_v26 = vld [vmem:[%s912_s3 + $0x48] sm:$0xff]  ;;  %v190_v31 = vld [vmem:[%s912_s3 + $0x50] sm:$0xff]  ;;  %p747_p5 = pnand %p746_p3, %p740_p0 }
  0x1f   : > { %628 = vmatprep.mubr.msk.bf16.mxu1 %vm818_vm0, %v817_v0  ;;  %649 = vmatpush3.bf16.msra.mxu0 %v734_v9  ;;  %v196_v27 = vld [vmem:[%s912_s3 + $0x80] sm:$0xff]  ;;  %v197_v28 = vld [vmem:[%s912_s3 + $0x88] sm:$0xff]  ;;  %v202_v29 = vpack.c.bf16 %v189_v26, %v188_v25  ;;  %v191_v32 = vld [vmem:[%s912_s3 + $0x58] sm:$0xff] }
  0x20   : > { %634 = vmatprep.subr.bf16.mxu1 %v817_v0  ;;  %650 = vmatprep.subr.bf16.mxu0 %v817_v0  ;;  %v206_v30 = vpack.c.bf16 %v197_v28, %v196_v27  ;;  %v203_v33 = vpack.c.bf16 %v191_v32, %v190_v31 }
  0x21   : > { %652 = vmatprep.mubr.msk.bf16.mxu0 %vm818_vm0, %v817_v0 }
  0x22   : > { %635 = vmatpush3.bf16.msra.mxu1 %v735_v13 }
  0x23   : > { %651 = vmatpush3.bf16.msra.mxu0 %v736_v14 }
  0x25   : > { %629 = vmatmul.mubr.msk.bf16.gmra.mrb[4].mxu1 %vm235_vm1, %v200_v17 }
  0x26   : > { %653 = vmatmul.mubr.msk.bf16.vlgmr.msra.gmra.mrb[4].mxu0 %vm235_vm1, %v204_v18  ;;  %636 = vmatprep.mubr.msk.bf16.mxu1 %vm818_vm0, %v817_v0 }
  0x27   : > { %656 = vmatprep.mubr.msk.bf16.mxu0 %vm818_vm0, %v817_v0 }
  0x2d   : > { %637 = vmatmul.mubr.msk.bf16.vlgmr.msra.gmra.mrb[8].mxu1 %vm235_vm1, %v201_v23 }
  0x2e   : > { %657 = vmatmul.mubr.msk.bf16.gmra.mrb[8].mxu0 %vm235_vm1, %v205_v24  ;;  %640 = vmatprep.mubr.msk.bf16.mxu1 %vm818_vm0, %v817_v0 }
  0x2f   : > { %660 = vmatprep.mubr.msk.bf16.mxu0 %vm818_vm0, %v817_v0 }
  0x35   : > { %641 = vmatmul.mubr.msk.bf16.gmra.mrb[12].mxu1 %vm235_vm1, %v202_v29 }
  0x36   : > { %661 = vmatmul.mubr.msk.bf16.gmra.mrb[12].mxu0 %vm235_vm1, %v206_v30  ;;  %644 = vmatprep.mubr.msk.bf16.mxu1 %vm818_vm0, %v817_v0 }
  0x3d   : > { %645 = vmatmul.mubr.msk.bf16.gmra.mrb[16].mxu1 %vm235_vm1, %v203_v33 }
  0xf0   : > { %v287_v34 = vpop.f32.mrb[0].mxu1 }
  0xf1   : > { %460 = vst.msk [vmem:[%s966_s6 + $0x10] sm:$0xff] %vm235_vm1, %v287_v34  ;;  %v626_v35 = vpop.f32.mrb[1].mxu1  ;;  %v279_v36 = vpop.f32.mrb[0].mxu0 }
  0xf2   : > { %v290_v37 = vpop.f32.mrb[2].mxu1  ;;  %458 = vst.msk [vmem:[%s966_s6] sm:$0xff] %vm235_vm1, %v279_v36  ;;  %v622_v38 = vpop.f32.mrb[1].mxu0 }
  0xf3   : > { %461 = vst.msk [vmem:[%s966_s6 + $0x18] sm:$0xff] %vm235_vm1, %v290_v37  ;;  %v627_v39 = vpop.f32.mrb[3].mxu1  ;;  %v282_v40 = vpop.f32.mrb[2].mxu0 }
  0xf4   : > { %459 = vst.msk [vmem:[%s966_s6 + $0x8] sm:$0xff] %vm235_vm1, %v282_v40  ;;  %v623_v41 = vpop.f32.mrb[3].mxu0 }
  0xf8   : > { %v295_v42 = vpop.f32.mrb[4].mxu1 }
  0xf9   : > { %462 = vst.msk [vmem:[%s966_s6 + $0x20] sm:$0xff] %vm235_vm1, %v295_v42  ;;  %v630_v43 = vpop.f32.mrb[5].mxu1  ;;  %v435_v44 = vpop.f32.mrb[4].mxu0 }
  0xfa   : > { %v298_v45 = vpop.f32.mrb[6].mxu1  ;;  %470 = vst.msk [vmem:[%s966_s6 + $0x60] sm:$0xff] %vm235_vm1, %v435_v44  ;;  %v654_v46 = vpop.f32.mrb[5].mxu0 }
  0xfb   : > { %463 = vst.msk [vmem:[%s966_s6 + $0x28] sm:$0xff] %vm235_vm1, %v298_v45  ;;  %v631_v47 = vpop.f32.mrb[7].mxu1  ;;  %v438_v48 = vpop.f32.mrb[6].mxu0 }
  0xfc   : > { %471 = vst.msk [vmem:[%s966_s6 + $0x68] sm:$0xff] %vm235_vm1, %v438_v48  ;;  %v655_v49 = vpop.f32.mrb[7].mxu0 }
 0x100   : > { %v357_v50 = vpop.f32.mrb[8].mxu1 }
 0x101   : > { %464 = vst.msk [vmem:[%s966_s6 + $0x30] sm:$0xff] %vm235_vm1, %v357_v50  ;;  %v638_v51 = vpop.f32.mrb[9].mxu1  ;;  %v443_v52 = vpop.f32.mrb[8].mxu0 }
 0x102   : > { %v360_v53 = vpop.f32.mrb[10].mxu1  ;;  %472 = vst.msk [vmem:[%s966_s6 + $0x70] sm:$0xff] %vm235_vm1, %v443_v52  ;;  %v658_v54 = vpop.f32.mrb[9].mxu0 }
 0x103   : > { %465 = vst.msk [vmem:[%s966_s6 + $0x38] sm:$0xff] %vm235_vm1, %v360_v53  ;;  %v639_v55 = vpop.f32.mrb[11].mxu1  ;;  %v446_v56 = vpop.f32.mrb[10].mxu0 }
 0x104   : > { %473 = vst.msk [vmem:[%s966_s6 + $0x78] sm:$0xff] %vm235_vm1, %v446_v56  ;;  %v659_v57 = vpop.f32.mrb[11].mxu0 }
 0x108   : > { %v365_v58 = vpop.f32.mrb[12].mxu1 }
 0x109   : > { %466 = vst.msk [vmem:[%s966_s6 + $0x40] sm:$0xff] %vm235_vm1, %v365_v58  ;;  %v642_v59 = vpop.f32.mrb[13].mxu1  ;;  %v451_v60 = vpop.f32.mrb[12].mxu0 }
 0x10a   : > { %v368_v61 = vpop.f32.mrb[14].mxu1  ;;  %474 = vst.msk [vmem:[%s966_s6 + $0x80] sm:$0xff] %vm235_vm1, %v451_v60  ;;  %v662_v62 = vpop.f32.mrb[13].mxu0 }
 0x10b   : > { %467 = vst.msk [vmem:[%s966_s6 + $0x48] sm:$0xff] %vm235_vm1, %v368_v61  ;;  %v643_v63 = vpop.f32.mrb[15].mxu1  ;;  %v454_v0 = vpop.f32.mrb[14].mxu0 }
 0x10c   : > { %475 = vst.msk [vmem:[%s966_s6 + $0x88] sm:$0xff] %vm235_vm1, %v454_v0  ;;  %v663_v1 = vpop.f32.mrb[15].mxu0 }
 0x110   : > { %v373_v2 = vpop.f32.mrb[16].mxu1 }
 0x111   : > { %468 = vst.msk [vmem:[%s966_s6 + $0x50] sm:$0xff] %vm235_vm1, %v373_v2  ;;  %v646_v3 = vpop.f32.mrb[17].mxu1 }
 0x112   : > { %v376_v4 = vpop.f32.mrb[18].mxu1 }
 0x113   : > { %469 = vst.msk [vmem:[%s966_s6 + $0x58] sm:$0xff] %vm235_vm1, %v376_v4  ;;  %v647_v5 = vpop.f32.mrb[19].mxu1 }
 0x114   : > { %750 = shalt.err (!%p747_p5)
}
 0x115   : > { %s751_s26 = scalar_lea.hbm %s1005_s18, 2304  ;;  %s755_s29 = scalar_lea.hbm %s1063_s2, 4608 }
 0x116   : > { %p752_p6 = scmp.ne.s32.totalorder %s1005_s18, %s751_s26  ;;  %p756_p10 = scmp.lt.u32.totalorder %s1005_s18, %s1063_s2 }
 0x117   : > { %p757_p11 = scmp.lt.u32.totalorder %s755_s29, %s751_s26  ;;  %p759_p13 = scmp.lt.u32.totalorder %s751_s26, %s1005_s18 }
 0x118   : > { %p753_p7 = pnand %p752_p6, %p877_p4 }
 0x119   : > { %p758_p12 = por %p757_p11, %p756_p10 }
 0x11a   : > { %p754_p9 = pneg %p753_p7 }
 0x11b   : > { %p760_p0 = por %p759_p13, %p758_p12 }
 0x11d   : > { %p761_p1 = pnand %p760_p0, %p754_p9 }
 0x11f   : > { %764 = shalt.err (!%p761_p1)
}
 0x120   : > { %s820_s4 = smov 128   ;;  %s821_s5 = smov 8  }
 0x121   : > { %671 = dma.vmem_to_hbm [thread:$0]  (%p877_p4), %s1007_s8, 2304, %s1005_s18, %s1015_s12, %s820_s4, %s820_s4, %s821_s5  }
 0x122 PF: > { %p678_p2 = scmp.ge.s32.totalorder %s815_s14, 2  ;;  %s508_s6 = sand.u32 1, %s795_s9  }
 0x123   : > { %s509_s7 = scalar_lea.sflag [#allocation3], %s508_s6 }
 0x124   : > { %p674_p3 = pnand %p678_p2, %p884_p8 }
 0x126   : > { %790 = dma.done.wait (!%p674_p3), %s509_s7, 2304  }
 0x127   : > { %792 = vsyncadd (!%p674_p3), %s509_s7, 4294964992  ;;  %s15_s14 = sadd.s32 1, %s815_s14   ;;  %s1066_s9 = smov %s799_s10 }
 0x128   : > { %p12_p5 = scmp.ge.s32.totalorder %s15_s14, 4   ;;  %s1067_s10 = smov %s803_s11 }
 0x129   : > { %s1068_s11 = smov %s890_s22  ;;  %s1069_s12 = smov %s811_s13 }
 0x12a   : > { %s1070_s13 = smov %s1072_s17  ;;  %14 = sbr.rel (!%p12_p5) target bundleno = 4 (0x4), region = 64 }
 0x131   :  { %514 = vsyncpa [#allocation3], 1 }
 0x132   :  { %516 = vsyncpa [#allocation3 + $0x1], 1 }

</bundles_post_ra>
